<compile_context>
chip_gen: v6e
topology: v6e:2x2x1
jax: 0.10.0
libtpu: 0.0.40
codegen_flags: <defaults>
</compile_context>

<pallas_src>
import functools
import math

import jax
import jax.numpy as jnp
from jax.experimental import pallas as pl
from jax.experimental.pallas import tpu as pltpu

LOG_SIG_MAX = 2.0
LOG_SIG_MIN = -20.0


def _round_up(x, m):
    return ((x + m - 1) // m) * m


# --------------------------------------------------------------------------
# Kernel
# --------------------------------------------------------------------------
def _actor_kernel(state_ref, w1_ref, b1_ref, w2_ref, b2_ref, wh_ref, bh_ref,
                  lo_ref, hi_ref, out_ref):
    x = state_ref[...]

    # Layer 1: Linear + ReLU (f32 accumulation on the MXU)
    h1 = jnp.dot(x, w1_ref[...], preferred_element_type=jnp.float32) + b1_ref[...]
    h1 = jnp.maximum(h1, 0.0).astype(w2_ref.dtype)

    # Layer 2: Linear + ReLU
    h2 = jnp.dot(h1, w2_ref[...], preferred_element_type=jnp.float32) + b2_ref[...]
    h2 = jnp.maximum(h2, 0.0).astype(wh_ref.dtype)

    # Fused heads: one matmul produces [mean | log_std | pad] in the lane dim.
    y = jnp.dot(h2, wh_ref[...], preferred_element_type=jnp.float32) + bh_ref[...]

    # Per-column clamp: lo/hi are (+-inf) on mean / padding columns and
    # (LOG_SIG_MIN, LOG_SIG_MAX) on the log_std columns.
    out_ref[...] = jnp.minimum(jnp.maximum(y, lo_ref[...]),
                               hi_ref[...]).astype(out_ref.dtype)


# --------------------------------------------------------------------------
# One-time parameter prep (hoisted out of the forward call path)
# --------------------------------------------------------------------------
def prep_actor_params(params, *, compute_dtype=jnp.bfloat16):
    """Fuse heads, pad to lane multiples, build clamp rows, cast operands.

    params : (w1, b1, w2, b2, wm, bm, ws, bs) with weights in (in, out)
             layout and biases as (1, out) rows (all f32).
    """
    w1, b1, w2, b2, wm, bm, ws, bs = params
    state_dim, hidden = w1.shape
    action_dim = wm.shape[1]

    hp = _round_up(hidden, 128)          # padded hidden width (lane-dense)
    op = _round_up(2 * action_dim, 128)  # padded fused-head output width

    def pad2(a, rows, cols):
        return jnp.pad(a, ((0, rows - a.shape[0]), (0, cols - a.shape[1])))

    w1p = pad2(w1, state_dim, hp)
    b1p = pad2(b1, 1, hp)
    w2p = pad2(w2, hp, hp)
    b2p = pad2(b2, 1, hp)

    wh = jnp.concatenate([wm, ws], axis=1)   # (hidden, 2A)
    bh = jnp.concatenate([bm, bs], axis=1)   # (1, 2A)
    whp = pad2(wh, hp, op)
    bhp = pad2(bh, 1, op)

    # Per-column clamp bounds keyed to *real* column indices:
    #   cols [0, A)      -> mean       : pass-through (-inf, +inf)
    #   cols [A, 2A)     -> log_std    : clamp to [-20, 2]
    #   cols [2A, op)    -> zero pad   : pass-through
    col = jnp.arange(op)
    is_log_std = (col >= action_dim) & (col < 2 * action_dim)
    lo = jnp.where(is_log_std, LOG_SIG_MIN, -jnp.inf).astype(jnp.float32)[None, :]
    hi = jnp.where(is_log_std, LOG_SIG_MAX, jnp.inf).astype(jnp.float32)[None, :]

    return {
        "w1": w1p.astype(compute_dtype),
        "b1": b1p,
        "w2": w2p.astype(compute_dtype),
        "b2": b2p,
        "wh": whp.astype(compute_dtype),
        "bh": bhp,
        "lo": lo,
        "hi": hi,
        "state_dim": state_dim,
        "action_dim": action_dim,
        "hidden_pad": hp,
        "out_cols": op,
        "compute_dtype": compute_dtype,
    }


# --------------------------------------------------------------------------
# Forward wrapper
# --------------------------------------------------------------------------
def actor_forward(state, prepped, *, block_batch=2048):
    """Fused Actor forward.

    state   : (B, state_dim) f32
    prepped : output of prep_actor_params
    Returns (mean, log_std), both (B, action_dim) f32.
    """
    B, sdim = state.shape
    assert sdim == prepped["state_dim"]
    action_dim = prepped["action_dim"]
    out_cols = prepped["out_cols"]
    compute_dtype = prepped["compute_dtype"]

    # Batch tiling: 16-row multiples for bf16 (packed sublanes), 8 for f32.
    row_mult = 16 if compute_dtype == jnp.bfloat16 else 8
    b_up = _round_up(B, row_mult)
    if b_up <= row_mult:
        tb = row_mult
    else:
        # Cap the tile at ceil(B/2) so there are >= 2 grid blocks
        # (lets the "parallel" batch axis shard across both v7x TensorCores).
        half = _round_up(-(-B // 2), row_mult)
        tb = min(block_batch, half)
        tb = max(row_mult, (tb // row_mult) * row_mult)
    b_pad = _round_up(B, tb)
    num_blocks = b_pad // tb

    x = state
    if b_pad != B:
        x = jnp.pad(x, ((0, b_pad - B), (0, 0)))
    x = x.astype(compute_dtype)

    w1, b1 = prepped["w1"], prepped["b1"]
    w2, b2 = prepped["w2"], prepped["b2"]
    wh, bh = prepped["wh"], prepped["bh"]
    lo, hi = prepped["lo"], prepped["hi"]

    # Weights / biases / clamp rows stay VMEM-resident (constant index map).
    resident = lambda arr: pl.BlockSpec(arr.shape, lambda i: (0, 0))

    in_specs = [
        pl.BlockSpec((tb, sdim), lambda i: (i, 0)),   # state: blocked on batch
        resident(w1), resident(b1),
        resident(w2), resident(b2),
        resident(wh), resident(bh),
        resident(lo), resident(hi),
    ]
    out_spec = pl.BlockSpec((tb, out_cols), lambda i: (i, 0))
    out_shape = jax.ShapeDtypeStruct((b_pad, out_cols), jnp.float32)

    out = pl.pallas_call(
        _actor_kernel,
        out_shape=out_shape,
        grid=(num_blocks,),
        in_specs=in_specs,
        out_specs=out_spec,
        compiler_params=pltpu.CompilerParams(
            dimension_semantics=("parallel",),
            vmem_limit_bytes=64 * 1024 * 1024),
    )(x, w1, b1, w2, b2, wh, bh, lo, hi)

    # Slice mean / log_std from the real (unpadded) column ranges.
    mean = out[:B, :action_dim]
    log_std = out[:B, action_dim:2 * action_dim]
    return mean, log_std


# --------------------------------------------------------------------------
# Init + pure-JAX reference
# --------------------------------------------------------------------------
def xavier_uniform(key, fan_in, fan_out):
    # torch.nn.init.xavier_uniform_ on a (fan_out, fan_in) weight, generated
    # directly in the transposed (fan_in, fan_out) layout used by the kernel.
    limit = math.sqrt(6.0 / (fan_in + fan_out))
    return jax.random.uniform(key, (fan_in, fan_out),
                              minval=-limit, maxval=limit, dtype=jnp.float32)


def init_actor_params(key, state_dim, action_dim, hidden_dim):
    k1, k2, k3, k4 = jax.random.split(key, 4)
    w1 = xavier_uniform(k1, state_dim, hidden_dim)
    b1 = jnp.zeros((1, hidden_dim), jnp.float32)
    w2 = xavier_uniform(k2, hidden_dim, hidden_dim)
    b2 = jnp.zeros((1, hidden_dim), jnp.float32)
    wm = xavier_uniform(k3, hidden_dim, action_dim)
    bm = jnp.zeros((1, action_dim), jnp.float32)
    ws = xavier_uniform(k4, hidden_dim, action_dim)
    bs = jnp.zeros((1, action_dim), jnp.float32)
    return (w1, b1, w2, b2, wm, bm, ws, bs)


def actor_forward_ref(state, params):
    """Pure-JAX reference for correctness check."""
    w1, b1, w2, b2, wm, bm, ws, bs = params
    h1 = jnp.maximum(state @ w1 + b1, 0.0)
    h2 = jnp.maximum(h1 @ w2 + b2, 0.0)
    mean = h2 @ wm + bm
    log_std = jnp.clip(h2 @ ws + bs, LOG_SIG_MIN, LOG_SIG_MAX)
    return mean, log_std


# TODO(synk): Actor.sample (Normal.rsample / tanh / log_prob correction) is a
# sampling routine outside forward(); it is not implemented as a kernel here.

if __name__ == "__main__":
    key = jax.random.PRNGKey(0)
    k_state, k_params, k_big = jax.random.split(key, 3)

    batch = 8
    state_dim = 8
    action_dim = 4
    hidden_dim = 32

    params = init_actor_params(k_params, state_dim, action_dim, hidden_dim)

    # One-time prepped parameter sets (hoisted out of the forward call path).
    prepped_f32 = prep_actor_params(params, compute_dtype=jnp.float32)
    prepped_bf16 = prep_actor_params(params)  # bf16 operands, f32 accumulation

    # --- small batch, f32 path (exact check) ---
    state = jax.random.normal(k_state, (batch, state_dim), dtype=jnp.float32)
    mean_ref, log_std_ref = actor_forward_ref(state, params)

    mean, log_std = actor_forward(state, prepped_f32)
    jax.block_until_ready((mean, log_std))
    assert mean.shape == (batch, action_dim)
    assert log_std.shape == (batch, action_dim)
    assert jnp.allclose(mean, mean_ref, atol=1e-5), "mean mismatch"
    assert jnp.allclose(log_std, log_std_ref, atol=1e-5), "log_std mismatch"
    assert float(log_std.max()) <= LOG_SIG_MAX + 1e-6
    assert float(log_std.min()) >= LOG_SIG_MIN - 1e-6

    # --- small batch, default bf16-operand path (loose tolerance) ---
    mean_h, log_std_h = actor_forward(state, prepped_bf16)
    jax.block_until_ready((mean_h, log_std_h))
    assert jnp.all(jnp.isfinite(mean_h)) and jnp.all(jnp.isfinite(log_std_h))
    assert jnp.allclose(mean_h, mean_ref, atol=2.5e-1), "bf16 mean too far off"
    assert jnp.allclose(log_std_h, log_std_ref, atol=2.5e-1), "bf16 log_std too far off"
    assert float(log_std_h.max()) <= LOG_SIG_MAX + 1e-3
    assert float(log_std_h.min()) >= LOG_SIG_MIN - 1e-3

    # --- multi-block grid with batch padding ---
    big_batch = 100
    state_big = jax.random.normal(k_big, (big_batch, state_dim), dtype=jnp.float32)
    mean_b_ref, log_std_b_ref = actor_forward_ref(state_big, params)

    mean_b, log_std_b = actor_forward(state_big, prepped_f32, block_batch=32)
    jax.block_until_ready((mean_b, log_std_b))
    assert mean_b.shape == (big_batch, action_dim)
    assert jnp.allclose(mean_b, mean_b_ref, atol=1e-5), "big-batch mean mismatch"
    assert jnp.allclose(log_std_b, log_std_b_ref, atol=1e-5), "big-batch log_std mismatch"

    mean_bh, log_std_bh = actor_forward(state_big, prepped_bf16, block_batch=32)
    jax.block_until_ready((mean_bh, log_std_bh))
    assert jnp.allclose(mean_bh, mean_b_ref, atol=2.5e-1), "big-batch bf16 mean off"
    assert jnp.allclose(log_std_bh, log_std_b_ref, atol=2.5e-1), "big-batch bf16 log_std off"

    print("KERNEL_OK")
</pallas_src>

<mosaic_0001>
module attributes {stable_mosaic.version = 11 : i64} {
  func.func @_actor_kernel(%arg0: i32, %arg1: memref<8x8xf32, #tpu.memory_space<vmem>>, %arg2: memref<8x128xf32, #tpu.memory_space<vmem>>, %arg3: memref<1x128xf32, #tpu.memory_space<vmem>>, %arg4: memref<128x128xf32, #tpu.memory_space<vmem>>, %arg5: memref<1x128xf32, #tpu.memory_space<vmem>>, %arg6: memref<128x128xf32, #tpu.memory_space<vmem>>, %arg7: memref<1x128xf32, #tpu.memory_space<vmem>>, %arg8: memref<1x128xf32, #tpu.memory_space<vmem>>, %arg9: memref<1x128xf32, #tpu.memory_space<vmem>>, %arg10: memref<8x128xf32, #tpu.memory_space<vmem>>) attributes {dimension_semantics = [#tpu.dimension_semantics<parallel>], iteration_bounds = array<i64: 1>, scalar_prefetch = 0 : i64, scratch_operands = 0 : i64, tpu.core_type = #tpu.core_type<tc>, window_params = [{transform_indices = @transform_0, window_bounds = array<i64: 8, 8>}, {pipeline_mode = #tpu.pipeline_mode<synchronous>, transform_indices = @transform_1, window_bounds = array<i64: 8, 128>}, {pipeline_mode = #tpu.pipeline_mode<synchronous>, transform_indices = @transform_2, window_bounds = array<i64: 1, 128>}, {pipeline_mode = #tpu.pipeline_mode<synchronous>, transform_indices = @transform_3, window_bounds = array<i64: 128, 128>}, {pipeline_mode = #tpu.pipeline_mode<synchronous>, transform_indices = @transform_4, window_bounds = array<i64: 1, 128>}, {pipeline_mode = #tpu.pipeline_mode<synchronous>, transform_indices = @transform_5, window_bounds = array<i64: 128, 128>}, {pipeline_mode = #tpu.pipeline_mode<synchronous>, transform_indices = @transform_6, window_bounds = array<i64: 1, 128>}, {pipeline_mode = #tpu.pipeline_mode<synchronous>, transform_indices = @transform_7, window_bounds = array<i64: 1, 128>}, {pipeline_mode = #tpu.pipeline_mode<synchronous>, transform_indices = @transform_8, window_bounds = array<i64: 1, 128>}, {transform_indices = @transform_9, window_bounds = array<i64: 8, 128>}]} {
    %c0 = arith.constant 0 : index
    %c0_0 = arith.constant 0 : index
    %0 = vector.load %arg1[%c0, %c0_0] : memref<8x8xf32, #tpu.memory_space<vmem>>, vector<8x8xf32>
    %c0_1 = arith.constant 0 : index
    %c0_2 = arith.constant 0 : index
    %1 = vector.load %arg2[%c0_1, %c0_2] : memref<8x128xf32, #tpu.memory_space<vmem>>, vector<8x128xf32>
    %cst = arith.constant dense<0.000000e+00> : vector<8x128xf32>
    %2 = tpu.matmul %0, %1, %cst {dimension_numbers = #tpu.dot_dimension_numbers<[1], [0], [0], [1], [0, 0, 1, 1], [], []>} : vector<8x8xf32>, vector<8x128xf32>, vector<8x128xf32> -> vector<8x128xf32>
    %c0_3 = arith.constant 0 : index
    %c0_4 = arith.constant 0 : index
    %3 = vector.load %arg3[%c0_3, %c0_4] : memref<1x128xf32, #tpu.memory_space<vmem>>, vector<1x128xf32>
    %4 = vector.broadcast %3 : vector<1x128xf32> to vector<8x128xf32>
    %5 = arith.addf %2, %4 : vector<8x128xf32>
    %cst_5 = arith.constant 0.000000e+00 : f32
    %6 = vector.broadcast %cst_5 : f32 to vector<8x128xf32>
    %7 = arith.maximumf %5, %6 : vector<8x128xf32>
    %c0_6 = arith.constant 0 : index
    %c0_7 = arith.constant 0 : index
    %8 = vector.load %arg4[%c0_6, %c0_7] : memref<128x128xf32, #tpu.memory_space<vmem>>, vector<128x128xf32>
    %cst_8 = arith.constant dense<0.000000e+00> : vector<8x128xf32>
    %9 = tpu.matmul %7, %8, %cst_8 {dimension_numbers = #tpu.dot_dimension_numbers<[1], [0], [0], [1], [0, 0, 1, 1], [], []>} : vector<8x128xf32>, vector<128x128xf32>, vector<8x128xf32> -> vector<8x128xf32>
    %c0_9 = arith.constant 0 : index
    %c0_10 = arith.constant 0 : index
    %10 = vector.load %arg5[%c0_9, %c0_10] : memref<1x128xf32, #tpu.memory_space<vmem>>, vector<1x128xf32>
    %11 = vector.broadcast %10 : vector<1x128xf32> to vector<8x128xf32>
    %12 = arith.addf %9, %11 : vector<8x128xf32>
    %cst_11 = arith.constant 0.000000e+00 : f32
    %13 = vector.broadcast %cst_11 : f32 to vector<8x128xf32>
    %14 = arith.maximumf %12, %13 : vector<8x128xf32>
    %c0_12 = arith.constant 0 : index
    %c0_13 = arith.constant 0 : index
    %15 = vector.load %arg6[%c0_12, %c0_13] : memref<128x128xf32, #tpu.memory_space<vmem>>, vector<128x128xf32>
    %cst_14 = arith.constant dense<0.000000e+00> : vector<8x128xf32>
    %16 = tpu.matmul %14, %15, %cst_14 {dimension_numbers = #tpu.dot_dimension_numbers<[1], [0], [0], [1], [0, 0, 1, 1], [], []>} : vector<8x128xf32>, vector<128x128xf32>, vector<8x128xf32> -> vector<8x128xf32>
    %c0_15 = arith.constant 0 : index
    %c0_16 = arith.constant 0 : index
    %17 = vector.load %arg7[%c0_15, %c0_16] : memref<1x128xf32, #tpu.memory_space<vmem>>, vector<1x128xf32>
    %18 = vector.broadcast %17 : vector<1x128xf32> to vector<8x128xf32>
    %19 = arith.addf %16, %18 : vector<8x128xf32>
    %c0_17 = arith.constant 0 : index
    %c0_18 = arith.constant 0 : index
    %20 = vector.load %arg8[%c0_17, %c0_18] : memref<1x128xf32, #tpu.memory_space<vmem>>, vector<1x128xf32>
    %21 = vector.broadcast %20 : vector<1x128xf32> to vector<8x128xf32>
    %22 = arith.maximumf %19, %21 : vector<8x128xf32>
    %c0_19 = arith.constant 0 : index
    %c0_20 = arith.constant 0 : index
    %23 = vector.load %arg9[%c0_19, %c0_20] : memref<1x128xf32, #tpu.memory_space<vmem>>, vector<1x128xf32>
    %24 = vector.broadcast %23 : vector<1x128xf32> to vector<8x128xf32>
    %25 = arith.minimumf %22, %24 : vector<8x128xf32>
    %c0_21 = arith.constant 0 : index
    %c0_22 = arith.constant 0 : index
    %26 = vector.load %arg10[%c0_21, %c0_22] : memref<8x128xf32, #tpu.memory_space<vmem>>, vector<8x128xf32>
    tpu.vector_store %arg10[%c0_21, %c0_22], %25 {strides = array<i32>} : memref<8x128xf32, #tpu.memory_space<vmem>>, vector<8x128xf32>,
    return
  }
  func.func @transform_0(%arg0: i32) -> (i32, i32) {
    %c0_i32 = arith.constant 0 : i32
    %c0_i32_0 = arith.constant 0 : i32
    return %arg0, %c0_i32 : i32, i32
  }
  func.func @transform_1(%arg0: i32) -> (i32, i32) {
    %c0_i32 = arith.constant 0 : i32
    %c0_i32_0 = arith.constant 0 : i32
    %c0_i32_1 = arith.constant 0 : i32
    return %c0_i32, %c0_i32_0 : i32, i32
  }
  func.func @transform_2(%arg0: i32) -> (i32, i32) {
    %c0_i32 = arith.constant 0 : i32
    %c0_i32_0 = arith.constant 0 : i32
    %c0_i32_1 = arith.constant 0 : i32
    return %c0_i32, %c0_i32_0 : i32, i32
  }
  func.func @transform_3(%arg0: i32) -> (i32, i32) {
    %c0_i32 = arith.constant 0 : i32
    %c0_i32_0 = arith.constant 0 : i32
    %c0_i32_1 = arith.constant 0 : i32
    return %c0_i32, %c0_i32_0 : i32, i32
  }
  func.func @transform_4(%arg0: i32) -> (i32, i32) {
    %c0_i32 = arith.constant 0 : i32
    %c0_i32_0 = arith.constant 0 : i32
    %c0_i32_1 = arith.constant 0 : i32
    return %c0_i32, %c0_i32_0 : i32, i32
  }
  func.func @transform_5(%arg0: i32) -> (i32, i32) {
    %c0_i32 = arith.constant 0 : i32
    %c0_i32_0 = arith.constant 0 : i32
    %c0_i32_1 = arith.constant 0 : i32
    return %c0_i32, %c0_i32_0 : i32, i32
  }
  func.func @transform_6(%arg0: i32) -> (i32, i32) {
    %c0_i32 = arith.constant 0 : i32
    %c0_i32_0 = arith.constant 0 : i32
    %c0_i32_1 = arith.constant 0 : i32
    return %c0_i32, %c0_i32_0 : i32, i32
  }
  func.func @transform_7(%arg0: i32) -> (i32, i32) {
    %c0_i32 = arith.constant 0 : i32
    %c0_i32_0 = arith.constant 0 : i32
    %c0_i32_1 = arith.constant 0 : i32
    return %c0_i32, %c0_i32_0 : i32, i32
  }
  func.func @transform_8(%arg0: i32) -> (i32, i32) {
    %c0_i32 = arith.constant 0 : i32
    %c0_i32_0 = arith.constant 0 : i32
    %c0_i32_1 = arith.constant 0 : i32
    return %c0_i32, %c0_i32_0 : i32, i32
  }
  func.func @transform_9(%arg0: i32) -> (i32, i32) {
    %c0_i32 = arith.constant 0 : i32
    %c0_i32_0 = arith.constant 0 : i32
    return %arg0, %c0_i32 : i32, i32
  }
}

</mosaic_0001>

<bundles_post_ra>
// kernel: tpu_custom_call.1
= control target key start
LH: loop header
LB: loop body
LE: loop exit
PB: predicated region body
PF: predicated region fallthrough
CT: control target
= control target key end

     0   :  { %14 = vsyncpa [#allocation3], 0  ;;  %s751_s0 = inlined_call_operand.hbm [shape: f32[8,8], index: 0, kind: input, shape index: {}]   ;;  %s752_s1 = inlined_call_operand.hbm [shape: f32[8,128], index: 1, kind: input, shape index: {}]   ;;  %s753_s2 = inlined_call_operand.vmem [shape: f32[1,128], index: 2, kind: input, shape index: {}]   ;;  %s754_s3 = inlined_call_operand.hbm [shape: f32[128,128], index: 3, kind: input, shape index: {}]   ;;  %s755_s4 = inlined_call_operand.vmem [shape: f32[1,128], index: 4, kind: input, shape index: {}]   ;;  %s756_s5 = inlined_call_operand.hbm [shape: f32[128,128], index: 5, kind: input, shape index: {}]   ;;  %s757_s6 = inlined_call_operand.vmem [shape: f32[1,128], index: 6, kind: input, shape index: {}]   ;;  %s758_s7 = inlined_call_operand.vmem [shape: f32[1,128], index: 7, kind: input, shape index: {}]   ;;  %s759_s8 = inlined_call_operand.vmem [shape: f32[1,128], index: 8, kind: input, shape index: {}]   ;;  %s760_s9 = inlined_call_operand.hbm [shape: f32[8,128], index: 9, kind: output, shape index: {}]  }
   0x1   :  { %15 = vsyncpa [#allocation6], 0 }
   0x2   :  { %16 = vsyncpa [#allocation9], 0 }
   0x3   :  { %17 = vsyncpa [#allocation4], 0  ;;  %s623_s30 = smov [#allocation5]   ;;  %s624_s11 = smov [#allocation2]  }
   0x4   :  { %s34_s10 = sshll.u32 %s623_s30, 4  ;;  %s24_s12 = sshll.u32 %s624_s11, 4  ;;  %s35_s10 = int_to_ptr.vmem [resolvable:$true] %s34_s10  ;;  %s25_s12 = int_to_ptr.vmem [resolvable:$true] %s24_s12 }
   0x5   :  { %s523_s13 = scalar_lea.vmem %s35_s10, 128  ;;  %p528_p1 = scmp.lt.s32.totalorder %s35_s10, %s35_s10 }
   0x6   :  { %p524_p0 = scmp.ne.s32.totalorder %s35_s10, %s523_s13  ;;  %p529_p2 = scmp.lt.s32.totalorder %s523_s13, %s523_s13 }
   0x8   :  { %p530_p3 = por %p529_p2, %p528_p1 }
   0xa   :  { %p531_p4 = pnand %p530_p3, %p524_p0 }
   0xc   :  { %534 = shalt.err (!%p531_p4)
}
   0xd   :  { %37 = dma.hbm_to_vmem [thread:$0]  %s752_s1, 128, %s35_s10, [#allocation6]  }
   0xe   :  { %s543_s16 = scalar_lea.vmem %s25_s12, 128  ;;  %p548_p6 = scmp.lt.s32.totalorder %s25_s12, %s25_s12 }
   0xf   :  { %p544_p5 = scmp.ne.s32.totalorder %s25_s12, %s543_s16  ;;  %p549_p7 = scmp.lt.s32.totalorder %s543_s16, %s543_s16 }
  0x11   :  { %p550_p8 = por %p549_p7, %p548_p6 }
  0x13   :  { %p551_p9 = pnand %p550_p8, %p544_p5 }
  0x15   :  { %554 = shalt.err (!%p551_p9)
}
  0x16   :  { %27 = dma.hbm_to_vmem [thread:$0]  %s751_s0, 128, %s25_s12, [#allocation3]  }
  0x17   :  { %s625_s19 = smov [#allocation7]  }
  0x18   :  { %s45_s20 = sshll.u32 %s625_s19, 4  ;;  %s46_s20 = int_to_ptr.vmem [resolvable:$true] %s45_s20 }
  0x19   :  { %s563_s21 = scalar_lea.vmem %s46_s20, 2048  ;;  %p568_p11 = scmp.lt.s32.totalorder %s46_s20, %s46_s20 }
  0x1a   :  { %p564_p10 = scmp.ne.s32.totalorder %s46_s20, %s563_s21  ;;  %p569_p12 = scmp.lt.s32.totalorder %s563_s21, %s563_s21 }
  0x1c   :  { %p570_p13 = por %p569_p12, %p568_p11 }
  0x1e   :  { %p571_p0 = pnand %p570_p13, %p564_p10 }
  0x20   :  { %574 = shalt.err (!%p571_p0)
}
  0x21   :  { %s626_s1 = smov 128   ;;  %s627_s22 = smov 8  }
  0x22   :  { %51 = dma.hbm_to_vmem [thread:$0]  %s754_s3, 2048, %s46_s20, [#allocation6], %s626_s1, %s626_s1, %s627_s22  }
  0x23   :  { %s628_s25 = smov [#allocation8]  }
  0x24   :  { %s59_s26 = sshll.u32 %s628_s25, 4  ;;  %s60_s26 = int_to_ptr.vmem [resolvable:$true] %s59_s26 }
  0x25   :  { %s583_s0 = scalar_lea.vmem %s60_s26, 2048  ;;  %p588_p2 = scmp.lt.s32.totalorder %s60_s26, %s60_s26 }
  0x26   :  { %p584_p1 = scmp.ne.s32.totalorder %s60_s26, %s583_s0  ;;  %p589_p3 = scmp.lt.s32.totalorder %s583_s0, %s583_s0 }
  0x28   :  { %p590_p4 = por %p589_p3, %p588_p2 }
  0x2a   :  { %p591_p5 = pnand %p590_p4, %p584_p1 }
  0x2c   :  { %594 = shalt.err (!%p591_p5)
}
  0x2d   :  { %65 = dma.hbm_to_vmem [thread:$0]  %s756_s5, 2048, %s60_s26, [#allocation9], %s626_s1, %s626_s1, %s627_s22  }
  0x2e   :  { %615 = dma.done.wait [#allocation3], 128  }
  0x2f   :  { %616 = vsyncadd [#allocation3], 4294967168 }
  0x30   :  { %617 = dma.done.wait [#allocation6], 2176  }
  0x31   :  { %618 = vsyncadd [#allocation6], 4294965120 }
  0x32   :  { %619 = dma.done.wait [#allocation9], 2048  }
  0x33   :  { %620 = vsyncadd [#allocation9], 4294965248  ;;  %v629_v0 = vmov 0.0   ;;  %vm630_vm0 = vmmov 0   ;;  %vm93_vm1 = vcmask 64512   ;;  %v85_v1 = vld [vmem:[#allocation5] sm:$0xff] }
  0x34   :  { %431 = vmatprep.subr.mxu0 %v629_v0  ;;  %433 = vmatprep.mubr.msk.f32.mxu0 %vm630_vm0, %v629_v0  ;;  %v84_v2 = vld [vmem:[#allocation2] sm:$0xff]  ;;  %v183_v3 = vld [vmem:[#allocation7 + $0x78] sm:$0xff]  ;;  %v181_v5 = vld [vmem:[#allocation7 + $0x68] sm:$0xff] }
  0x35   :  { %436 = vmatprep.subr.mxu1 %v629_v0  ;;  %468 = vmatprep.mubr.msk.f32.mxu1 %vm630_vm0, %v629_v0  ;;  %v182_v4 = vld [vmem:[#allocation7 + $0x70] sm:$0xff]  ;;  %v180_v6 = vld [vmem:[#allocation7 + $0x60] sm:$0xff]  ;;  %v179_v7 = vld [vmem:[#allocation7 + $0x58] sm:$0xff] }
  0x36   :  { %432 = vmatpush3.msra.mxu0 %v85_v1  ;;  %437 = vmatpush3.msra.mxu1 %v183_v3  ;;  %v178_v8 = vld [vmem:[#allocation7 + $0x50] sm:$0xff]  ;;  %v177_v9 = vld [vmem:[#allocation7 + $0x48] sm:$0xff]  ;;  %v176_v10 = vld [vmem:[#allocation7 + $0x40] sm:$0xff] }
  0x37   :  { %434 = vmatmul.mubr.msk.f32.vlgmr.msra.gmra.mxu0 %vm93_vm1, %v84_v2  ;;  %438 = vmatprep.subr.mxu1 %v629_v0  ;;  %v175_v11 = vld [vmem:[#allocation7 + $0x38] sm:$0xff]  ;;  %v174_v12 = vld [vmem:[#allocation7 + $0x30] sm:$0xff]  ;;  %v173_v13 = vld [vmem:[#allocation7 + $0x28] sm:$0xff] }
  0x38   :  { %439 = vmatpush3.msra.mxu1 %v182_v4  ;;  %471 = vmatprep.subr.mxu0 %v629_v0  ;;  %v172_v14 = vld [vmem:[#allocation7 + $0x20] sm:$0xff]  ;;  %v171_v15 = vld [vmem:[#allocation7 + $0x18] sm:$0xff]  ;;  %v170_v16 = vld [vmem:[#allocation7 + $0x10] sm:$0xff] }
  0x39   :  { %440 = vmatprep.subr.mxu1 %v629_v0  ;;  %503 = vmatprep.mubr.msk.f32.mxu0 %vm630_vm0, %v629_v0  ;;  %v169_v17 = vld [vmem:[#allocation7 + $0x8] sm:$0xff]  ;;  %v168_v18 = vld [vmem:[#allocation7] sm:$0xff]  ;;  %v277_v19 = vld [vmem:[#allocation8 + $0x78] sm:$0xff] }
  0x3a   :  { %441 = vmatpush3.msra.mxu1 %v181_v5  ;;  %v276_v20 = vld [vmem:[#allocation8 + $0x70] sm:$0xff]  ;;  %472 = vmatpush3.msra.mxu0 %v277_v19  ;;  %v275_v21 = vld [vmem:[#allocation8 + $0x68] sm:$0xff]  ;;  %v274_v22 = vld [vmem:[#allocation8 + $0x60] sm:$0xff] }
  0x3b   :  { %442 = vmatprep.subr.mxu1 %v629_v0  ;;  %473 = vmatprep.subr.mxu0 %v629_v0  ;;  %v273_v23 = vld [vmem:[#allocation8 + $0x58] sm:$0xff]  ;;  %v272_v24 = vld [vmem:[#allocation8 + $0x50] sm:$0xff]  ;;  %v271_v25 = vld [vmem:[#allocation8 + $0x48] sm:$0xff] }
  0x3c   :  { %443 = vmatpush3.msra.mxu1 %v180_v6  ;;  %474 = vmatpush3.msra.mxu0 %v276_v20  ;;  %v270_v26 = vld [vmem:[#allocation8 + $0x40] sm:$0xff]  ;;  %v269_v27 = vld [vmem:[#allocation8 + $0x38] sm:$0xff]  ;;  %v268_v28 = vld [vmem:[#allocation8 + $0x30] sm:$0xff] }
  0x3d   :  { %444 = vmatprep.subr.mxu1 %v629_v0  ;;  %475 = vmatprep.subr.mxu0 %v629_v0  ;;  %v267_v29 = vld [vmem:[#allocation8 + $0x28] sm:$0xff]  ;;  %v266_v30 = vld [vmem:[#allocation8 + $0x20] sm:$0xff]  ;;  %v265_v31 = vld [vmem:[#allocation8 + $0x18] sm:$0xff] }
  0x3e   :  { %445 = vmatpush3.msra.mxu1 %v179_v7  ;;  %476 = vmatpush3.msra.mxu0 %v275_v21  ;;  %v389_v32 = vld [vmem:[%s753_s2] ss:$0 sm:$0xff]  ;;  %v263_v38 = vld [vmem:[#allocation8 + $0x8] sm:$0xff]  ;;  %v262_v39 = vld [vmem:[#allocation8] sm:$0xff] }
  0x3f   :  { %446 = vmatprep.subr.mxu1 %v629_v0  ;;  %477 = vmatprep.subr.mxu0 %v629_v0  ;;  %v264_v37 = vld [vmem:[#allocation8 + $0x10] sm:$0xff] }
  0x40   :  { %447 = vmatpush3.msra.mxu1 %v178_v8  ;;  %478 = vmatpush3.msra.mxu0 %v274_v22  ;;  %v391_v40 = vld [vmem:[%s755_s4] ss:$0 sm:$0xff]  ;;  %s631_s4 = smov [#allocation10]  }
  0x41   :  { %448 = vmatprep.subr.mxu1 %v629_v0  ;;  %479 = vmatprep.subr.mxu0 %v629_v0  ;;  %v392_v45 = vld [vmem:[%s757_s6] ss:$0 sm:$0xff]  ;;  %s378_s15 = sshll.u32 %s631_s4, 4  ;;  %s379_s15 = int_to_ptr.vmem [resolvable:$true] %s378_s15 }
  0x42   :  { %449 = vmatpush3.msra.mxu1 %v177_v9  ;;  %480 = vmatpush3.msra.mxu0 %v273_v23  ;;  %v393_v47 = vld [vmem:[%s758_s7] ss:$0 sm:$0xff]  ;;  %s595_s16 = scalar_lea.vmem %s379_s15, 128  ;;  %p600_p7 = scmp.lt.s32.totalorder %s379_s15, %s379_s15 }
  0x43   :  { %450 = vmatprep.subr.mxu1 %v629_v0  ;;  %481 = vmatprep.subr.mxu0 %v629_v0  ;;  %v394_v50 = vld [vmem:[%s759_s8] ss:$0 sm:$0xff]  ;;  %p596_p6 = scmp.ne.s32.totalorder %s379_s15, %s595_s16  ;;  %p601_p8 = scmp.lt.s32.totalorder %s595_s16, %s595_s16 }
  0x44   :  { %451 = vmatpush3.msra.mxu1 %v176_v10  ;;  %482 = vmatpush3.msra.mxu0 %v272_v24 }
  0x45   :  { %452 = vmatprep.subr.mxu1 %v629_v0  ;;  %483 = vmatprep.subr.mxu0 %v629_v0  ;;  %p602_p9 = por %p601_p8, %p600_p7 }
  0x46   :  { %453 = vmatpush3.msra.mxu1 %v175_v11  ;;  %484 = vmatpush3.msra.mxu0 %v271_v25 }
  0x47   :  { %454 = vmatprep.subr.mxu1 %v629_v0  ;;  %485 = vmatprep.subr.mxu0 %v629_v0  ;;  %p603_p10 = pnand %p602_p9, %p596_p6 }
  0x48   :  { %455 = vmatpush3.msra.mxu1 %v174_v12  ;;  %486 = vmatpush3.msra.mxu0 %v270_v26 }
  0x49   :  { %456 = vmatprep.subr.mxu1 %v629_v0  ;;  %487 = vmatprep.subr.mxu0 %v629_v0 }
  0x4a   :  { %457 = vmatpush3.msra.mxu1 %v173_v13  ;;  %488 = vmatpush3.msra.mxu0 %v269_v27 }
  0x4b   :  { %458 = vmatprep.subr.mxu1 %v629_v0  ;;  %489 = vmatprep.subr.mxu0 %v629_v0 }
  0x4c   :  { %459 = vmatpush3.msra.mxu1 %v172_v14  ;;  %490 = vmatpush3.msra.mxu0 %v268_v28 }
  0x4d   :  { %460 = vmatprep.subr.mxu1 %v629_v0  ;;  %491 = vmatprep.subr.mxu0 %v629_v0 }
  0x4e   :  { %461 = vmatpush3.msra.mxu1 %v171_v15  ;;  %492 = vmatpush3.msra.mxu0 %v267_v29 }
  0x4f   :  { %462 = vmatprep.subr.mxu1 %v629_v0  ;;  %493 = vmatprep.subr.mxu0 %v629_v0 }
  0x50   :  { %463 = vmatpush3.msra.mxu1 %v170_v16  ;;  %494 = vmatpush3.msra.mxu0 %v266_v30 }
  0x51   :  { %464 = vmatprep.subr.mxu1 %v629_v0  ;;  %495 = vmatprep.subr.mxu0 %v629_v0 }
  0x52   :  { %465 = vmatpush3.msra.mxu1 %v169_v17  ;;  %496 = vmatpush3.msra.mxu0 %v265_v31 }
  0x53   :  { %466 = vmatprep.subr.mxu1 %v629_v0  ;;  %497 = vmatprep.subr.mxu0 %v629_v0 }
  0x54   :  { %467 = vmatpush3.msra.mxu1 %v168_v18  ;;  %498 = vmatpush3.msra.mxu0 %v264_v37 }
  0x55   :  { %499 = vmatprep.subr.mxu0 %v629_v0 }
  0x56   :  { %500 = vmatpush3.msra.mxu0 %v263_v38 }
  0x57   :  { %501 = vmatprep.subr.mxu0 %v629_v0 }
  0x58   :  { %502 = vmatpush3.msra.mxu0 %v262_v39 }
  0xf7   :  { %v163_v33 = vpop.f32.mrf.mxu0 }
  0xf8   :  { %v164_v34 = vadd.f32 %v389_v32, %v163_v33 }
  0xf9   :  { %v435_v35 = vpop.f32.mrf.mxu0 }
  0xfa   :  { %v167_v36 = vmax.f32 %v164_v34, 0.0 }
  0xfc   :  { %469 = vmatmul.mubr.f32.vlgmr.msra.gmra.mxu1 %v167_v36 }
 0x1bc   :  { %v257_v41 = vpop.f32.mrf.mxu1 }
 0x1bd   :  { %v258_v42 = vadd.f32 %v391_v40, %v257_v41 }
 0x1be   :  { %v470_v43 = vpop.f32.mrf.mxu1 }
 0x1bf   :  { %v261_v44 = vmax.f32 %v258_v42, 0.0 }
 0x1c1   :  { %504 = vmatmul.mubr.f32.vlgmr.msra.gmra.mxu0 %v261_v44 }
 0x281   :  { %v351_v46 = vpop.f32.mrf.mxu0 }
 0x282   :  { %v352_v48 = vadd.f32 %v392_v45, %v351_v46 }
 0x283   :  { %v505_v49 = vpop.f32.mrf.mxu0 }
 0x284   :  { %v362_v51 = vmax.f32 %v352_v48, %v393_v47 }
 0x286   :  { %v370_v52 = vmin.f32 %v362_v51, %v394_v50 }
 0x288   :  { %371 = vst [vmem:[#allocation10] sm:$0xff] %v370_v52 }
 0x289   :  { %606 = shalt.err (!%p603_p10)
}
 0x28a   :  { %381 = dma.vmem_to_hbm [thread:$0]  %s379_s15, 128, %s760_s9, [#allocation4]  }
 0x28b   :  { %621 = dma.done.wait [#allocation4], 128  }
 0x28c   :  { %622 = vsyncadd [#allocation4], 4294967168 }
 0x28d   :  { %385 = vsyncpa [#allocation3], 1 }
 0x28e   :  { %386 = vsyncpa [#allocation6], 1 }
 0x28f   :  { %387 = vsyncpa [#allocation9], 1 }
 0x290   :  { %388 = vsyncpa [#allocation4], 1 }

</bundles_post_ra>
